<compile_context>
chip_gen: v5e
topology: v5e:2x2
jax: 0.10.0
libtpu: 0.0.40
codegen_flags: <defaults>
</compile_context>

<pallas_src>
import jax
import jax.numpy as jnp
from jax.experimental import pallas as pl
from jax.experimental.pallas import tpu as pltpu

_LANES = 128


def _add_offset_kernel(scale_ref, x_ref, b_ref, o_ref):
    # Elementwise hot path on (1, S, 128) blocks: out = x + scale * bias.
    # scale is a scalar read from SMEM; bias block is reused for every batch
    # index via its index_map (broadcast over batch happens through tiling).
    o_ref[...] = x_ref[...] + scale_ref[0] * b_ref[...]


def _ceil_to(x, m):
    return -(-x // m) * m


def _choose_tiling(n, f, itemsize, target_block_bytes=4 << 20):
    """Pick (S, R_pad, T): x/out/bias blocks are (1, S, 128); grid = (T, n)."""
    sub = 8 * (4 // itemsize)               # sublane multiple: 8 f32 / 16 bf16
    r = pl.cdiv(f, _LANES)                  # rows of 128 lanes covering f
    # Largest S (multiple of `sub`) whose single x block fits the budget.
    s_max = max(sub, (target_block_bytes // (_LANES * itemsize)) // sub * sub)
    s = min(s_max, _ceil_to(r, sub))
    # v7x has 2 TensorCores: keep >= 2 grid steps whenever the problem allows.
    if n == 1 and r > sub:
        s = min(s, max(sub, _ceil_to(pl.cdiv(r, 2), sub)))
    r_pad = _ceil_to(r, s)
    return s, r_pad, r_pad // s


def add_offset(x, bias, scale=10.0):
    """x: (N, C, H, W), bias: (1, C, H, W) -> x + scale * bias."""
    n, c, h, w = x.shape
    assert bias.shape == (1, c, h, w)
    f = c * h * w
    itemsize = jnp.dtype(x.dtype).itemsize

    s, r_pad, t = _choose_tiling(n, f, itemsize)
    f_pad = r_pad * _LANES

    # Lane-dense, sublane-dense views (layout plumbing only).
    x2 = x.reshape(n, f)
    b2 = bias.reshape(1, f)
    if f_pad != f:
        x2 = jnp.pad(x2, ((0, 0), (0, f_pad - f)))
        b2 = jnp.pad(b2, ((0, 0), (0, f_pad - f)))
    x3 = x2.reshape(n, r_pad, _LANES)
    b3 = b2.reshape(1, r_pad, _LANES)

    scale_arr = jnp.asarray(scale, dtype=x.dtype).reshape(1)

    # VMEM budget: pipeline double-buffers x, bias and out blocks (6 buffers).
    block_bytes = s * _LANES * itemsize
    vmem_limit = max(int(6 * block_bytes) + (4 << 20), 16 << 20)

    out3 = pl.pallas_call(
        _add_offset_kernel,
        out_shape=jax.ShapeDtypeStruct((n, r_pad, _LANES), x.dtype),
        grid_spec=pltpu.PrefetchScalarGridSpec(
            num_scalar_prefetch=0,
            grid=(t, n),                      # tiles outer, batch inner
            in_specs=[
                # scale: whole (1,) array resident in SMEM (works if traced).
                pl.BlockSpec(memory_space=pltpu.MemorySpace.SMEM),
                # x: one batch row, one (S, 128) feature tile.
                pl.BlockSpec((1, s, _LANES), lambda ti, bi: (bi, ti, 0)),
                # bias: same feature tile, batch index ignored -> block index
                # unchanged across the inner axis, so each bias tile is DMA'd
                # exactly once; broadcast over batch stays in-kernel.
                pl.BlockSpec((1, s, _LANES), lambda ti, bi: (0, ti, 0)),
            ],
            out_specs=pl.BlockSpec((1, s, _LANES), lambda ti, bi: (bi, ti, 0)),
        ),
        compiler_params=pltpu.CompilerParams(
            dimension_semantics=("parallel", "parallel"),
            vmem_limit_bytes=vmem_limit,
        ),
    )(scale_arr, x3, b3)

    out2 = out3.reshape(n, f_pad)
    if f_pad != f:
        out2 = out2[:, :f]
    return out2.reshape(n, c, h, w)


if __name__ == "__main__":
    # Module config (small, consistent with the forward pass).
    N, C, H, W = 2, 4, 16, 16
    scale = 10.0

    key = jax.random.PRNGKey(0)
    kx, kb = jax.random.split(key)
    x = jax.random.normal(kx, (N, C, H, W), dtype=jnp.float32)
    # nn.Parameter(torch.zeros(...)) initializes bias to zeros; also exercise
    # a nonzero bias so the broadcast path is actually tested.
    bias_zero = jnp.zeros((1, C, H, W), dtype=jnp.float32)
    bias_rand = 0.01 * jax.random.normal(kb, (1, C, H, W), dtype=jnp.float32)

    out_zero = jax.block_until_ready(add_offset(x, bias_zero, scale))
    out_rand = jax.block_until_ready(add_offset(x, bias_rand, scale))

    assert out_zero.shape == (N, C, H, W)
    assert jnp.allclose(out_zero, x + scale * bias_zero, atol=1e-6)
    assert jnp.allclose(out_rand, x + scale * bias_rand, atol=1e-6)

    # Also exercise the f % 128 != 0 padding path (C*H*W = 75).
    C2, H2, W2 = 3, 5, 5
    x_odd = jax.random.normal(kx, (N, C2, H2, W2), dtype=jnp.float32)
    b_odd = 0.01 * jax.random.normal(kb, (1, C2, H2, W2), dtype=jnp.float32)
    out_odd = jax.block_until_ready(add_offset(x_odd, b_odd, scale))
    assert out_odd.shape == (N, C2, H2, W2)
    assert jnp.allclose(out_odd, x_odd + scale * b_odd, atol=1e-6)

    print("KERNEL_OK")
</pallas_src>

<mosaic_0001>
module attributes {stable_mosaic.version = 11 : i64} {
  func.func @_add_offset_kernel(%arg0: i32, %arg1: i32, %arg2: memref<1xf32, #tpu.memory_space<smem>>, %arg3: memref<1x8x128xf32, #tpu.memory_space<vmem>>, %arg4: memref<1x8x128xf32, #tpu.memory_space<vmem>>, %arg5: memref<1x8x128xf32, #tpu.memory_space<vmem>>) attributes {dimension_semantics = [#tpu.dimension_semantics<parallel>, #tpu.dimension_semantics<parallel>], iteration_bounds = array<i64: 1, 2>, scalar_prefetch = 0 : i64, scratch_operands = 0 : i64, tpu.core_type = #tpu.core_type<tc>, window_params = [{transform_indices = @transform_0, window_bounds = array<i64: 1>}, {transform_indices = @transform_1, window_bounds = array<i64: 1, 8, 128>}, {transform_indices = @transform_2, window_bounds = array<i64: 1, 8, 128>}, {transform_indices = @transform_3, window_bounds = array<i64: 1, 8, 128>}]} {
    %c0 = arith.constant 0 : index
    %c0_0 = arith.constant 0 : index
    %c0_1 = arith.constant 0 : index
    %0 = vector.load %arg3[%c0, %c0_0, %c0_1] : memref<1x8x128xf32, #tpu.memory_space<vmem>>, vector<1x8x128xf32>
    %c0_2 = arith.constant 0 : index
    %1 = memref.load %arg2[%c0_2] : memref<1xf32, #tpu.memory_space<smem>>
    %c0_3 = arith.constant 0 : index
    %c0_4 = arith.constant 0 : index
    %c0_5 = arith.constant 0 : index
    %2 = vector.load %arg4[%c0_3, %c0_4, %c0_5] : memref<1x8x128xf32, #tpu.memory_space<vmem>>, vector<1x8x128xf32>
    %3 = vector.broadcast %1 : f32 to vector<1x8x128xf32>
    %4 = arith.mulf %3, %2 : vector<1x8x128xf32>
    %5 = arith.addf %0, %4 : vector<1x8x128xf32>
    %c0_6 = arith.constant 0 : index
    %c0_7 = arith.constant 0 : index
    %c0_8 = arith.constant 0 : index
    %6 = vector.load %arg5[%c0_6, %c0_7, %c0_8] : memref<1x8x128xf32, #tpu.memory_space<vmem>>, vector<1x8x128xf32>
    tpu.vector_store %arg5[%c0_6, %c0_7, %c0_8], %5 {strides = array<i32>} : memref<1x8x128xf32, #tpu.memory_space<vmem>>, vector<1x8x128xf32>,
    return
  }
  func.func @transform_0(%arg0: i32, %arg1: i32) -> i32 {
    %c0_i32 = arith.constant 0 : i32
    %c0_i32_0 = arith.constant 0 : i32
    return %c0_i32 : i32
  }
  func.func @transform_1(%arg0: i32, %arg1: i32) -> (i32, i32, i32) {
    %c0_i32 = arith.constant 0 : i32
    %c0_i32_0 = arith.constant 0 : i32
    return %arg1, %arg0, %c0_i32 : i32, i32, i32
  }
  func.func @transform_2(%arg0: i32, %arg1: i32) -> (i32, i32, i32) {
    %c0_i32 = arith.constant 0 : i32
    %c0_i32_0 = arith.constant 0 : i32
    %c0_i32_1 = arith.constant 0 : i32
    return %c0_i32, %arg0, %c0_i32_0 : i32, i32, i32
  }
  func.func @transform_3(%arg0: i32, %arg1: i32) -> (i32, i32, i32) {
    %c0_i32 = arith.constant 0 : i32
    %c0_i32_0 = arith.constant 0 : i32
    return %arg1, %arg0, %c0_i32 : i32, i32, i32
  }
}

</mosaic_0001>

<bundles_post_ra>
// kernel: tpu_custom_call.1
= control target key start
LH: loop header
LB: loop body
LE: loop exit
PB: predicated region body
PF: predicated region fallthrough
CT: control target
= control target key end

     0   :  { %s753_s0 = inlined_call_operand.<no memory space> [shape: f32[1], index: 0, kind: input, shape index: {}]   ;;  %s754_s1 = inlined_call_operand.hbm [shape: f32[2,8,128], index: 1, kind: input, shape index: {}]   ;;  %s755_s2 = inlined_call_operand.hbm [shape: f32[1,8,128], index: 2, kind: input, shape index: {}]   ;;  %s756_s3 = inlined_call_operand.hbm [shape: f32[2,8,128], index: 3, kind: output, shape index: {}]  }
   0x1   :  { %8 = sst [smem:[#allocation2]] %s753_s0 }
   0x2   :  { %9 = vsyncpa [#allocation4], 0 }
   0x3   :  { %11 = vsyncpa [#allocation4 + $0x1], 0 }
   0x4   :  { %12 = vsyncpa [#allocation7], 0 }
   0x5   :  { %13 = vsyncpa [#allocation5], 0 }
   0x6   :  { %15 = vsyncpa [#allocation5 + $0x1], 0  ;;  %s604_s14 = smov 0   ;;  %s606_s15 = smov 0  }
   0x7   :  { %s608_s16 = smov 0   ;;  %s610_s17 = smov 0  }
   0x8   :  { %s612_s18 = smov 0   ;;  %s614_s19 = smov 0  }
   0x9 LB: > { %s344_s0 = sadd.s32 4294967295, %s578_s19   ;;  %s345_s20 = sadd.s32 4294967294, %s578_s19   ;;  %s578_s19 = sphi %s614_s19, %s21_s19   ;;  %s574_s18 = sphi %s612_s18, %s768_s18   ;;  %s570_s17 = sphi %s610_s17, %s767_s17   ;;  %s566_s16 = sphi %s608_s16, %s766_s16   ;;  %s562_s15 = sphi %s606_s15, %s765_s15   ;;  %s558_s14 = sphi %s604_s14, %s764_s14  }
   0xa   : > { %p76_p0 = scmp.ne.s32.totalorder %s562_s15, %s558_s14  ;;  %p638_p1 = scmp.eq.s32.totalorder %s344_s0, 0 }
   0xb   : > { %p642_p2 = scmp.eq.s32.totalorder %s344_s0, 1  ;;  %p134_p3 = scmp.eq.s32.totalorder %s345_s20, 1 }
   0xc   : > { %p648_p4 = por %p638_p1, %p76_p0  ;;  %p346_p5 = scmp.ge.s32.totalorder %s578_s19, 1 }
   0xd   : > { %p653_p6 = por %p134_p3, %p76_p0  ;;  %p141_p7 = scmp.lt.s32.totalorder %s578_s19, 3 }
   0xe   : > { %s158_s27 = sshll.u32 %s755_s2, 4  ;;  %p348_p9 = scmp.ge.s32.totalorder %s578_s19, 2  ;;  %s159_s27 = int_to_ptr.hbm [resolvable:$true] %s158_s27 }
   0xf   : > { %p661_p8 = pnand %p346_p5, %p141_p7  ;;  %s580_s29 = smov [#allocation6]  }
  0x10   : > { %s160_s30 = sshll.u32 %s580_s29, 4  ;;  %s30_s4 = sadd.s32 1, %s574_s18  ;;  %s161_s30 = int_to_ptr.vmem [resolvable:$true] %s160_s30 }
  0x11   : > { %p367_p10 = pneg %p661_p8  ;;  %p31_p12 = scmp.ge.s32.totalorder %s30_s4, 2 }
  0x12   : > { %s63_s5 = sadd.s32 1, %s566_s16  ;;  %p70_p13 = scmp.ne.s32.totalorder %s566_s16, %s562_s15 }
  0x13   : > { %p368_p11 = pnand %p367_p10, %p638_p1  ;;  %p71_p0 = scmp.eq.s32.totalorder %s578_s19, 0 }
  0x14   : > { %s770_s4 = smov (%p31_p12, %s30_s4), 0  ;;  %p683_p5 = por %p642_p2, %p70_p13 }
  0x15   : > { %370 = dma.hbm_to_vmem [thread:$0]  (!%p368_p11), %s159_s27, 128, %s161_s30, [#allocation7]  }
  0x16   : > { %p677_p3 = por %p71_p0, %p70_p13  ;;  %s58_s8 = ssub.s32 %s574_s18, %s770_s4 }
  0x17   : > { %p380_p7 = scmp.lt.s32.totalorder %s578_s19, 2  ;;  %p61_p10 = scmp.eq.s32.totalorder %s58_s8, 0 }
  0x18   : > { %s171_s9 = sand.u32 1, %s566_s16   ;;  %s350_s12 = sshll.u32 %s574_s18, 3 }
  0x19   : > { %s349_s10 = sshll.u32 %s171_s9, 3  ;;  %s180_s20 = scalar_lea.hbm %s754_s1, %s350_s12 }
  0x1a   : > { %s692_s11 = scalar_select %p61_p10, %s566_s16, %s63_s5  }
  0x1b   : > { %s175_s25 = scalar_lea.vmem [#allocation3], %s349_s10  ;;  %s182_s22 = sshll.u32 %s180_s20, 4  ;;  %s183_s22 = int_to_ptr.hbm [resolvable:$true] %s182_s22 }
  0x1c   : > { %s184_s26 = sshll.u32 %s175_s25, 4  ;;  %p372_p2 = pnand %p380_p7, %p677_p3  ;;  %s185_s26 = int_to_ptr.vmem [resolvable:$true] %s184_s26 }
  0x1d   : > { %s172_s27 = scalar_lea.sflag [#allocation4], %s171_s9  ;;  %193 = sbr.rel (%p661_p8) target bundleno = 52 (0x34), region = 32 }
  0x1e   : > { %374 = dma.hbm_to_vmem [thread:$0]  (!%p372_p2), %s183_s22, 128, %s185_s26, %s172_s27  }
  0x1f   : > { %s703_s29 = sand.u32 (!%p661_p8), 1, %s562_s15  }
  0x20   : > { %s352_s30 = sshll.u32 (!%p661_p8), %s703_s29, 3  ;;  %s196_s5 = scalar_lea.sflag (!%p661_p8), [#allocation4], %s703_s29 }
  0x21   : > { %s199_s8 = scalar_lea.vmem (!%p661_p8), [#allocation3], %s352_s30 }
  0x22   : > { %545 = dma.done.wait (%p648_p4), %s196_s5, 128  }
  0x23   : > { %547 = vsyncadd (%p648_p4), %s196_s5, 4294967168 }
  0x24   : > { %549 = dma.done.wait (%p638_p1), [#allocation7], 128  }
  0x25   : > { %551 = vsyncadd (%p638_p1), [#allocation7], 4294967168  ;;  %s229_s28 = sld [smem:[#allocation2]]  ;;  %s356_s6 = sshll.u32 %s570_s17, 3  ;;  %v228_v0 = vld [vmem:[%s199_s8] sm:$0xff]  ;;  %v230_v1 = vld [vmem:[#allocation6] sm:$0xff] }
  0x26   : > { %s247_s12 = scalar_lea.hbm %s756_s3, %s356_s6  ;;  %s227_s23 = scalar_lea.vmem [#allocation8], %s352_s30 }
  0x27   : > { %s249_s13 = sshll.u32 %s227_s23, 4  ;;  %s251_s0 = sshll.u32 %s247_s12, 4  ;;  %s250_s13 = int_to_ptr.vmem [resolvable:$true] %s249_s13  ;;  %s252_s0 = int_to_ptr.hbm [resolvable:$true] %s251_s0 }
  0x28   : > { %s236_s21 = scalar_lea.sflag [#allocation5], %s703_s29  ;;  %s506_s20 = sshra.s32 %s252_s0, 4  ;;  %s507_s20 = int_to_ptr.hbm [resolvable:$true] %s506_s20 }
  0x29   : > { %s508_s17 = scalar_lea.hbm %s507_s20, 8  ;;  %s512_s22 = scalar_lea.hbm %s756_s3, 16 }
  0x2a   : > { %p509_p1 = scmp.ne.s32.totalorder %s507_s20, %s508_s17  ;;  %p513_p11 = scmp.lt.s32.totalorder %s507_s20, %s756_s3 }
  0x2b   : > { %v231_v2 = vstv %s229_s28  ;;  %p514_p12 = scmp.lt.s32.totalorder %s512_s22, %s508_s17 }
  0x2c   : > { %v232_v3 = vmul.f32 %v231_v2, %v230_v1  ;;  %p510_p4 = pnand %p509_p1, %p683_p5 }
  0x2d   : > { %p515_p13 = por %p514_p12, %p513_p11 }
  0x2e   : > { %v233_v4 = vadd.f32 %v232_v3, %v228_v0  ;;  %p511_p8 = pneg %p510_p4 }
  0x30   : > { %234 = vst [vmem:[%s227_s23] sm:$0xff] %v233_v4  ;;  %p516_p0 = pnand %p515_p13, %p511_p8 }
  0x32   : > { %519 = shalt.err (!%p516_p0)
}
  0x33   : > { %365 = dma.vmem_to_hbm [thread:$0]  (%p683_p5), %s250_s13, 128, %s252_s0, %s236_s21  }
  0x34 PF: > { %s263_s29 = sand.u32 1, %s558_s14   ;;  %p376_p3 = pnand %p348_p9, %p653_p6 }
  0x35   : > { %s264_s5 = scalar_lea.sflag [#allocation5], %s263_s29 }
  0x36   : > { %p377_p7 = pneg %p376_p3 }
  0x38   : > { %553 = dma.done.wait (%p377_p7), %s264_s5, 128  }
  0x39   : > { %555 = vsyncadd (%p377_p7), %s264_s5, 4294967168  ;;  %s21_s19 = sadd.s32 1, %s578_s19   ;;  %s764_s14 = smov %s562_s15 }
  0x3a   : > { %p18_p10 = scmp.ge.s32.totalorder %s21_s19, 4   ;;  %s765_s15 = smov %s566_s16 }
  0x3b   : > { %s766_s16 = smov %s692_s11  ;;  %s767_s17 = smov %s574_s18 }
  0x3c   : > { %s768_s18 = smov %s770_s4  ;;  %20 = sbr.rel (!%p18_p10) target bundleno = 9 (0x9), region = 82 }
  0x41   :  { %270 = vsyncpa [#allocation4], 1 }
  0x42   :  { %272 = vsyncpa [#allocation4 + $0x1], 1 }
  0x43   :  { %273 = vsyncpa [#allocation7], 1 }
  0x44   :  { %274 = vsyncpa [#allocation5], 1 }
  0x45   :  { %276 = vsyncpa [#allocation5 + $0x1], 1 }

</bundles_post_ra>
